<compile_context>
chip_gen: v6e
topology: v6e:2x2x1
jax: 0.10.0
libtpu: 0.0.40
codegen_flags: <defaults>
</compile_context>

<pallas_src>
import functools
import math

import jax
import jax.numpy as jnp
from jax.experimental import pallas as pl
from jax.experimental.pallas import tpu as pltpu


def _gelu_new(x):
    # transformer_lens gelu_new: 0.5*x*(1 + tanh(sqrt(2/pi)*(x + 0.044715*x^3)))
    c = math.sqrt(2.0 / math.pi)
    return 0.5 * x * (1.0 + jnp.tanh(c * (x + 0.044715 * x * x * x)))


def _round_up(x, m):
    return (x + m - 1) // m * m


def _tpu_info():
    kind = ""
    try:
        kind = jax.devices()[0].device_kind.lower()
    except Exception:
        pass
    vmem = None
    try:
        vmem = int(pltpu.get_tpu_info().vmem_capacity_bytes)
    except Exception:
        vmem = None
    if not vmem or vmem <= 0:
        vmem = (64 << 20) if "v7" in kind else (128 << 20)
    return kind, vmem


def _auto_gelu_dtype(d_model, kind):
    # bf16 VPU/EUP exist on v6e/v7x only; keep f32 on v5e/v4.  Only worthwhile
    # when d_model is small enough for elementwise work to rival MXU work.
    if d_model <= 2048 and ("v6" in kind or "v7" in kind):
        return jnp.bfloat16
    return jnp.float32


def _mlp_kernel(x_ref, w_in_ref, b_in_ref, w_out_ref, b_out_ref, o_ref,
                *scratch, gelu_dtype, compute_dtype):
    # f32 output: accumulate straight into o_ref (block index constant over
    # the H axis, so it is VMEM-resident).  Otherwise use the f32 scratch.
    acc_ref = scratch[0] if scratch else o_ref
    h = pl.program_id(1)

    @pl.when(h == 0)
    def _init():
        # Fold b_out into the accumulator init: added exactly once.
        acc_ref[...] = jnp.broadcast_to(
            b_out_ref[...].astype(acc_ref.dtype), acc_ref.shape)

    # First matmul on the MXU (bf16 inputs, f32 accumulation) + f32 b_in.
    pre = jnp.dot(x_ref[...].astype(compute_dtype), w_in_ref[...],
                  preferred_element_type=jnp.float32) + b_in_ref[...]
    # gelu_new on the VPU/EUP (dtype chosen per generation).
    post = _gelu_new(pre.astype(gelu_dtype))
    # Partial contraction over this H block, accumulated in f32.
    acc_ref[...] += jnp.dot(post.astype(compute_dtype), w_out_ref[...],
                            preferred_element_type=jnp.float32)

    if scratch:
        @pl.when(h == pl.num_programs(1) - 1)
        def _finalize():
            o_ref[...] = acc_ref[...].astype(o_ref.dtype)


def mlp_forward(x, W_in, b_in, W_out, b_out, *, compute_dtype=jnp.bfloat16,
                gelu_dtype=None, tm=None, th=None):
    """x: [batch, pos, d_model] -> [batch, pos, d_model]."""
    B, P, D = x.shape
    H = W_in.shape[1]
    M = B * P
    out_dtype = x.dtype

    kind, vmem_cap = _tpu_info()
    budget = int(vmem_cap * 0.85)   # leave Mosaic scratch/semaphore headroom
    if gelu_dtype is None:
        gelu_dtype = _auto_gelu_dtype(D, kind)

    x_item = jnp.dtype(x.dtype).itemsize
    out_item = jnp.dtype(out_dtype).itemsize
    w_item = jnp.dtype(compute_dtype).itemsize
    use_scratch = out_dtype != jnp.float32

    def vmem_need(tm_, th_):
        # Pipelined inputs/outputs are double-buffered by BlockSpec.
        need = 2 * tm_ * D * x_item              # x row tile
        need += 2 * D * th_ * w_item             # W_in block
        need += 2 * th_ * D * w_item             # W_out block
        need += 2 * 8 * th_ * 4                  # b_in (sublane-padded)
        need += 2 * 8 * D * 4                    # b_out
        need += 2 * tm_ * D * out_item           # output tile
        if use_scratch:
            need += tm_ * D * 4                  # f32 accumulator scratch
        return need

    # ---- Tile selection --------------------------------------------------
    tm_full = _round_up(M, 8)
    if tm is not None:
        tm_opts = [min(_round_up(int(tm), 8), tm_full)]
    else:
        tm_opts = []
        for t in (1024, 768, 512, 384, 256, 128, 64, 32, 16, 8):
            t = min(t, tm_full)
            if t not in tm_opts:
                tm_opts.append(t)

    chosen = None
    if th is None:
        # 1) Weight residency: th = d_mlp -> constant weight index maps, the
        #    weights are DMA'd once and kept resident across all row tiles.
        for t in tm_opts:
            if vmem_need(t, H) <= budget:
                chosen = (t, H)
                break
        # 2) Otherwise stream d_mlp in blocks (shrink th before tm).
        if chosen is None:
            for t in tm_opts:
                for o in (1024, 512, 256, 128):
                    if o <= H and vmem_need(t, o) <= budget:
                        chosen = (t, o)
                        break
                if chosen is not None:
                    break
        if chosen is None:
            chosen = (tm_opts[-1], min(H, 128))
    else:
        th_use = min(int(th), H)
        for t in tm_opts:
            if vmem_need(t, th_use) <= budget:
                chosen = (t, th_use)
                break
        if chosen is None:
            chosen = (tm_opts[-1], th_use)
    tm, th = chosen

    # v7x has 2 TensorCores: give the "parallel" row axis extent >= 2 when the
    # weights are resident (halving tm then costs no extra weight streaming).
    if th == H and "v7" in kind:
        while pl.cdiv(M, tm) < 2 and tm > 8 and M > tm // 2:
            tm //= 2

    # ---- Operand prep (one-time weight cast; x stays in its own dtype) ----
    H_pad = H if th == H else _round_up(H, th)
    x2 = x.reshape(M, D)
    w_in = W_in.astype(compute_dtype)
    w_out = W_out.astype(compute_dtype)
    b_in2 = b_in.reshape(1, H).astype(jnp.float32)
    b_out2 = b_out.reshape(1, D).astype(jnp.float32)
    if H_pad != H:
        # gelu_new(0) == 0, so zero-padded hidden columns contribute nothing.
        w_in = jnp.pad(w_in, ((0, 0), (0, H_pad - H)))
        w_out = jnp.pad(w_out, ((0, H_pad - H), (0, 0)))
        b_in2 = jnp.pad(b_in2, ((0, 0), (0, H_pad - H)))

    kernel = functools.partial(_mlp_kernel, gelu_dtype=gelu_dtype,
                               compute_dtype=compute_dtype)
    scratch_shapes = [pltpu.VMEM((tm, D), jnp.float32)] if use_scratch else []

    out2 = pl.pallas_call(
        kernel,
        out_shape=jax.ShapeDtypeStruct((M, D), out_dtype),
        grid_spec=pltpu.PrefetchScalarGridSpec(
            num_scalar_prefetch=0,
            grid=(pl.cdiv(M, tm), H_pad // th),
            in_specs=[
                pl.BlockSpec((tm, D), lambda i, h: (i, 0)),   # x row tile
                pl.BlockSpec((D, th), lambda i, h: (0, h)),   # W_in column block
                pl.BlockSpec((1, th), lambda i, h: (0, h)),   # b_in block
                pl.BlockSpec((th, D), lambda i, h: (h, 0)),   # W_out row block
                pl.BlockSpec((1, D), lambda i, h: (0, 0)),    # b_out (constant)
            ],
            out_specs=pl.BlockSpec((tm, D), lambda i, h: (i, 0)),
            scratch_shapes=scratch_shapes,
        ),
        compiler_params=pltpu.CompilerParams(
            dimension_semantics=("parallel", "arbitrary"),
            vmem_limit_bytes=int(budget)),
    )(x2, w_in, b_in2, w_out, b_out2)

    return out2.reshape(B, P, D)


def mlp_reference_f32(x, W_in, b_in, W_out, b_out):
    pre = jnp.einsum("bpd,dm->bpm", x.astype(jnp.float32),
                     W_in.astype(jnp.float32)) + b_in.astype(jnp.float32)
    post = _gelu_new(pre)
    return (jnp.einsum("bpm,md->bpd", post, W_out.astype(jnp.float32))
            + b_out.astype(jnp.float32))


def mlp_reference_matched(x, W_in, b_in, W_out, b_out, *,
                          compute_dtype=jnp.bfloat16, gelu_dtype=jnp.float32):
    # Reference matching the kernel's bf16-matmul / f32-accumulate / gelu dtype.
    pre = jnp.einsum("bpd,dm->bpm", x.astype(compute_dtype),
                     W_in.astype(compute_dtype),
                     preferred_element_type=jnp.float32) + b_in.astype(jnp.float32)
    post = _gelu_new(pre.astype(gelu_dtype))
    out = jnp.einsum("bpm,md->bpd", post.astype(compute_dtype),
                     W_out.astype(compute_dtype),
                     preferred_element_type=jnp.float32) + b_out.astype(jnp.float32)
    return out


if __name__ == "__main__":
    # Small config: batch=2, pos=8, d_model=128, d_mlp=512.
    batch, pos, d_model, d_mlp = 2, 8, 128, 512
    key = jax.random.PRNGKey(0)
    kx, kwi, kwo = jax.random.split(key, 3)

    x = jax.random.normal(kx, (batch, pos, d_model), dtype=jnp.float32)
    # Deterministic init for the empty parameters; biases zero (matches
    # nn.Parameter(torch.zeros(...)) in __init__).
    W_in = jax.random.normal(kwi, (d_model, d_mlp), dtype=jnp.float32) / math.sqrt(d_model)
    b_in = jnp.zeros((d_mlp,), dtype=jnp.float32)
    W_out = jax.random.normal(kwo, (d_mlp, d_model), dtype=jnp.float32) / math.sqrt(d_mlp)
    b_out = jnp.zeros((d_model,), dtype=jnp.float32)

    kind, _ = _tpu_info()
    gd = _auto_gelu_dtype(d_model, kind)

    ref_f32 = mlp_reference_f32(x, W_in, b_in, W_out, b_out)
    ref_mt = mlp_reference_matched(x, W_in, b_in, W_out, b_out, gelu_dtype=gd)

    # 1) Auto config: weight-resident, f32 output accumulated in-place.
    out1 = jax.block_until_ready(
        mlp_forward(x, W_in, b_in, W_out, b_out, gelu_dtype=gd))
    assert out1.shape == (batch, pos, d_model)
    assert jnp.allclose(out1, ref_mt, atol=3e-3, rtol=3e-3), "mismatch (auto)"
    assert jnp.allclose(out1, ref_f32, atol=5e-2, rtol=5e-2), "mismatch vs f32 ref"

    # 2) Forced d_mlp streaming (exercises the multi-step reduction path).
    out2 = jax.block_until_ready(
        mlp_forward(x, W_in, b_in, W_out, b_out, gelu_dtype=gd, th=256))
    assert jnp.allclose(out2, ref_mt, atol=3e-3, rtol=3e-3), "mismatch (streamed)"

    # 3) bf16 activations/output (exercises the f32 scratch accumulator path).
    out3 = jax.block_until_ready(
        mlp_forward(x.astype(jnp.bfloat16), W_in, b_in, W_out, b_out, gelu_dtype=gd))
    assert out3.dtype == jnp.bfloat16
    assert jnp.allclose(out3.astype(jnp.float32), ref_f32, atol=8e-2, rtol=8e-2), \
        "mismatch (bf16 out)"

    # 4) Ragged rows: batch*pos not a multiple of the row tile (masked tail).
    xr = x[:, :7, :]
    outr = jax.block_until_ready(
        mlp_forward(xr, W_in, b_in, W_out, b_out, gelu_dtype=gd))
    assert outr.shape == (batch, 7, d_model)
    assert jnp.allclose(outr, ref_mt[:, :7, :], atol=3e-3, rtol=3e-3), "mismatch (ragged)"

    print("KERNEL_OK")
</pallas_src>

<mosaic_0001>
module attributes {stable_mosaic.version = 11 : i64} {
  func.func @_mlp_kernel(%arg0: i32, %arg1: i32, %arg2: memref<16x128xf32, #tpu.memory_space<vmem>>, %arg3: memref<128x512xbf16, #tpu.memory_space<vmem>>, %arg4: memref<1x512xf32, #tpu.memory_space<vmem>>, %arg5: memref<512x128xbf16, #tpu.memory_space<vmem>>, %arg6: memref<1x128xf32, #tpu.memory_space<vmem>>, %arg7: memref<16x128xf32, #tpu.memory_space<vmem>>) attributes {dimension_semantics = [#tpu.dimension_semantics<parallel>, #tpu.dimension_semantics<arbitrary>], iteration_bounds = array<i64: 1, 1>, scalar_prefetch = 0 : i64, scratch_operands = 0 : i64, tpu.core_type = #tpu.core_type<tc>, window_params = [{transform_indices = @transform_0, window_bounds = array<i64: 16, 128>}, {transform_indices = @transform_1, window_bounds = array<i64: 128, 512>}, {transform_indices = @transform_2, window_bounds = array<i64: 1, 512>}, {transform_indices = @transform_3, window_bounds = array<i64: 512, 128>}, {pipeline_mode = #tpu.pipeline_mode<synchronous>, transform_indices = @transform_4, window_bounds = array<i64: 1, 128>}, {transform_indices = @transform_5, window_bounds = array<i64: 16, 128>}]} {
    %c0_i32 = arith.constant 0 : i32
    %0 = arith.cmpi eq, %arg1, %c0_i32 : i32
    %1 = arith.extui %0 : i1 to i32
    %c0_i32_0 = arith.constant 0 : i32
    %2 = arith.cmpi ne, %1, %c0_i32_0 : i32
    scf.if %2 {
      %c0_17 = arith.constant 0 : index
      %c0_18 = arith.constant 0 : index
      %29 = vector.load %arg6[%c0_17, %c0_18] : memref<1x128xf32, #tpu.memory_space<vmem>>, vector<1x128xf32>
      %30 = vector.shape_cast %29 : vector<1x128xf32> to vector<1x128xf32>
      %31 = vector.broadcast %30 : vector<1x128xf32> to vector<16x128xf32>
      %c0_19 = arith.constant 0 : index
      %c0_20 = arith.constant 0 : index
      %32 = vector.load %arg7[%c0_19, %c0_20] : memref<16x128xf32, #tpu.memory_space<vmem>>, vector<16x128xf32>
      tpu.vector_store %arg7[%c0_19, %c0_20], %31 {strides = array<i32>} : memref<16x128xf32, #tpu.memory_space<vmem>>, vector<16x128xf32>,
    } else {
    }
    %c0 = arith.constant 0 : index
    %c0_1 = arith.constant 0 : index
    %3 = vector.load %arg2[%c0, %c0_1] : memref<16x128xf32, #tpu.memory_space<vmem>>, vector<16x128xf32>
    %4 = arith.truncf %3 : vector<16x128xf32> to vector<16x128xbf16>
    %c0_2 = arith.constant 0 : index
    %c0_3 = arith.constant 0 : index
    %5 = vector.load %arg3[%c0_2, %c0_3] : memref<128x512xbf16, #tpu.memory_space<vmem>>, vector<128x512xbf16>
    %cst = arith.constant dense<0.000000e+00> : vector<16x512xf32>
    %6 = tpu.matmul %4, %5, %cst {dimension_numbers = #tpu.dot_dimension_numbers<[1], [0], [0], [1], [0, 0, 1, 1], [], []>} : vector<16x128xbf16>, vector<128x512xbf16>, vector<16x512xf32> -> vector<16x512xf32>
    %c0_4 = arith.constant 0 : index
    %c0_5 = arith.constant 0 : index
    %7 = vector.load %arg4[%c0_4, %c0_5] : memref<1x512xf32, #tpu.memory_space<vmem>>, vector<1x512xf32>
    %8 = vector.broadcast %7 : vector<1x512xf32> to vector<16x512xf32>
    %9 = arith.addf %6, %8 : vector<16x512xf32>
    %cst_6 = arith.constant 5.000000e-01 : f32
    %10 = vector.broadcast %cst_6 : f32 to vector<16x512xf32>
    %11 = arith.mulf %10, %9 : vector<16x512xf32>
    %cst_7 = arith.constant 4.471500e-02 : f32
    %12 = vector.broadcast %cst_7 : f32 to vector<16x512xf32>
    %13 = arith.mulf %12, %9 : vector<16x512xf32>
    %14 = arith.mulf %13, %9 : vector<16x512xf32>
    %15 = arith.mulf %14, %9 : vector<16x512xf32>
    %16 = arith.addf %9, %15 : vector<16x512xf32>
    %cst_8 = arith.constant 0.797884583 : f32
    %17 = vector.broadcast %cst_8 : f32 to vector<16x512xf32>
    %18 = arith.mulf %17, %16 : vector<16x512xf32>
    %19 = math.tanh %18 : vector<16x512xf32>
    %cst_9 = arith.constant 1.000000e+00 : f32
    %20 = vector.broadcast %cst_9 : f32 to vector<16x512xf32>
    %21 = arith.addf %20, %19 : vector<16x512xf32>
    %22 = arith.mulf %11, %21 : vector<16x512xf32>
    %c0_10 = arith.constant 0 : index
    %c0_11 = arith.constant 0 : index
    %23 = vector.load %arg7[%c0_10, %c0_11] : memref<16x128xf32, #tpu.memory_space<vmem>>, vector<16x128xf32>
    %24 = arith.truncf %22 : vector<16x512xf32> to vector<16x512xbf16>
    %c0_12 = arith.constant 0 : index
    %c0_13 = arith.constant 0 : index
    %25 = vector.load %arg5[%c0_12, %c0_13] : memref<512x128xbf16, #tpu.memory_space<vmem>>, vector<512x128xbf16>
    %cst_14 = arith.constant dense<0.000000e+00> : vector<16x128xf32>
    %26 = tpu.matmul %24, %25, %cst_14 {dimension_numbers = #tpu.dot_dimension_numbers<[1], [0], [0], [1], [0, 0, 1, 1], [], []>} : vector<16x512xbf16>, vector<512x128xbf16>, vector<16x128xf32> -> vector<16x128xf32>
    %27 = arith.addf %23, %26 : vector<16x128xf32>
    %c0_15 = arith.constant 0 : index
    %c0_16 = arith.constant 0 : index
    %28 = vector.load %arg7[%c0_15, %c0_16] : memref<16x128xf32, #tpu.memory_space<vmem>>, vector<16x128xf32>
    tpu.vector_store %arg7[%c0_15, %c0_16], %27 {strides = array<i32>} : memref<16x128xf32, #tpu.memory_space<vmem>>, vector<16x128xf32>,
    return
  }
  func.func @transform_0(%arg0: i32, %arg1: i32) -> (i32, i32) {
    %c0_i32 = arith.constant 0 : i32
    %c0_i32_0 = arith.constant 0 : i32
    return %arg0, %c0_i32 : i32, i32
  }
  func.func @transform_1(%arg0: i32, %arg1: i32) -> (i32, i32) {
    %c0_i32 = arith.constant 0 : i32
    %c0_i32_0 = arith.constant 0 : i32
    return %c0_i32, %arg1 : i32, i32
  }
  func.func @transform_2(%arg0: i32, %arg1: i32) -> (i32, i32) {
    %c0_i32 = arith.constant 0 : i32
    %c0_i32_0 = arith.constant 0 : i32
    return %c0_i32, %arg1 : i32, i32
  }
  func.func @transform_3(%arg0: i32, %arg1: i32) -> (i32, i32) {
    %c0_i32 = arith.constant 0 : i32
    %c0_i32_0 = arith.constant 0 : i32
    return %arg1, %c0_i32 : i32, i32
  }
  func.func @transform_4(%arg0: i32, %arg1: i32) -> (i32, i32) {
    %c0_i32 = arith.constant 0 : i32
    %c0_i32_0 = arith.constant 0 : i32
    %c0_i32_1 = arith.constant 0 : i32
    return %c0_i32, %c0_i32_0 : i32, i32
  }
  func.func @transform_5(%arg0: i32, %arg1: i32) -> (i32, i32) {
    %c0_i32 = arith.constant 0 : i32
    %c0_i32_0 = arith.constant 0 : i32
    return %arg0, %c0_i32 : i32, i32
  }
}

</mosaic_0001>

<bundles_post_ra>
// kernel: tpu_custom_call.1
= control target key start
LH: loop header
LB: loop body
LE: loop exit
PB: predicated region body
PF: predicated region fallthrough
CT: control target
= control target key end

     0   :  { %10 = vsyncpa [#allocation3], 0  ;;  %s1249_s0 = inlined_call_operand.hbm [shape: f32[16,128], index: 0, kind: input, shape index: {}]   ;;  %s1250_s1 = inlined_call_operand.hbm [shape: bf16[128,512], index: 1, kind: input, shape index: {}]   ;;  %s1251_s2 = inlined_call_operand.hbm [shape: f32[1,512], index: 2, kind: input, shape index: {}]   ;;  %s1252_s3 = inlined_call_operand.hbm [shape: bf16[512,128], index: 3, kind: input, shape index: {}]   ;;  %s1253_s4 = inlined_call_operand.vmem [shape: f32[1,128], index: 4, kind: input, shape index: {}]   ;;  %s1254_s5 = inlined_call_operand.hbm [shape: f32[16,128], index: 5, kind: output, shape index: {}]  }
   0x1   :  { %11 = vsyncpa [#allocation6], 0 }
   0x2   :  { %12 = vsyncpa [#allocation9], 0 }
   0x3   :  { %13 = vsyncpa [#allocation4], 0  ;;  %s1155_s18 = smov [#allocation5]  }
   0x4   :  { %s31_s19 = sshll.u32 %s1155_s18, 4  ;;  %s32_s19 = int_to_ptr.vmem [resolvable:$true] %s31_s19 }
   0x5   :  { %s1055_s20 = scalar_lea.vmem %s32_s19, 4096  ;;  %p1060_p1 = scmp.lt.s32.totalorder %s32_s19, %s32_s19 }
   0x6   :  { %p1056_p0 = scmp.ne.s32.totalorder %s32_s19, %s1055_s20  ;;  %p1061_p2 = scmp.lt.s32.totalorder %s1055_s20, %s1055_s20 }
   0x8   :  { %p1062_p3 = por %p1061_p2, %p1060_p1 }
   0xa   :  { %p1063_p4 = pnand %p1062_p3, %p1056_p0 }
   0xc   :  { %1066 = shalt.err (!%p1063_p4)
}
   0xd   :  { %s1156_s21 = smov 256   ;;  %s1157_s22 = smov 16  }
   0xe   :  { %37 = dma.hbm_to_vmem [thread:$0]  %s1250_s1, 4096, %s32_s19, [#allocation6], %s1156_s21, %s1156_s21, %s1157_s22  }
   0xf   :  { %s1158_s25 = smov [#allocation2]  }
  0x10   :  { %s19_s26 = sshll.u32 %s1158_s25, 4  ;;  %s20_s26 = int_to_ptr.vmem [resolvable:$true] %s19_s26 }
  0x11   :  { %s1075_s27 = scalar_lea.vmem %s20_s26, 256  ;;  %p1080_p6 = scmp.lt.s32.totalorder %s20_s26, %s20_s26 }
  0x12   :  { %p1076_p5 = scmp.ne.s32.totalorder %s20_s26, %s1075_s27  ;;  %p1081_p7 = scmp.lt.s32.totalorder %s1075_s27, %s1075_s27 }
  0x14   :  { %p1082_p8 = por %p1081_p7, %p1080_p6 }
  0x16   :  { %p1083_p9 = pnand %p1082_p8, %p1076_p5 }
  0x18   :  { %1086 = shalt.err (!%p1083_p9)
}
  0x19   :  { %s1159_s28 = smov 128   ;;  %s1160_s29 = smov 8  }
  0x1a   :  { %25 = dma.hbm_to_vmem [thread:$0]  %s1249_s0, 256, %s20_s26, [#allocation3], %s1159_s28, %s1159_s28, %s1160_s29  }
  0x1b   :  { %s1161_s1 = smov [#allocation7]   ;;  %s1162_s8 = smov [#allocation8]  }
  0x1c   :  { %s44_s7 = sshll.u32 %s1161_s1, 4  ;;  %s53_s9 = sshll.u32 %s1162_s8, 4  ;;  %s45_s7 = int_to_ptr.vmem [resolvable:$true] %s44_s7  ;;  %s54_s9 = int_to_ptr.vmem [resolvable:$true] %s53_s9 }
  0x1d   :  { %s1095_s10 = scalar_lea.vmem %s45_s7, 64  ;;  %p1100_p11 = scmp.lt.s32.totalorder %s45_s7, %s45_s7 }
  0x1e   :  { %p1096_p10 = scmp.ne.s32.totalorder %s45_s7, %s1095_s10  ;;  %p1101_p12 = scmp.lt.s32.totalorder %s1095_s10, %s1095_s10 }
  0x20   :  { %p1102_p13 = por %p1101_p12, %p1100_p11 }
  0x22   :  { %p1103_p0 = pnand %p1102_p13, %p1096_p10 }
  0x24   :  { %1106 = shalt.err (!%p1103_p0)
}
  0x25   :  { %47 = dma.hbm_to_vmem [thread:$0]  %s1251_s2, 64, %s45_s7, [#allocation6]  }
  0x26   :  { %s1115_s13 = scalar_lea.vmem %s54_s9, 4096  ;;  %p1120_p2 = scmp.lt.s32.totalorder %s54_s9, %s54_s9 }
  0x27   :  { %p1116_p1 = scmp.ne.s32.totalorder %s54_s9, %s1115_s13  ;;  %p1121_p3 = scmp.lt.s32.totalorder %s1115_s13, %s1115_s13 }
  0x29   :  { %p1122_p4 = por %p1121_p3, %p1120_p2 }
  0x2b   :  { %p1123_p5 = pnand %p1122_p4, %p1116_p1 }
  0x2d   :  { %1126 = shalt.err (!%p1123_p5)
}
  0x2e   :  { %s1163_s0 = smov 64   ;;  %s1164_s14 = smov 4  }
  0x2f   :  { %59 = dma.hbm_to_vmem [thread:$0]  %s1252_s3, 4096, %s54_s9, [#allocation9], %s1163_s0, %s1163_s0, %s1164_s14  }
  0x30   :  { %1147 = dma.done.wait [#allocation3], 256  }
  0x31   :  { %1148 = vsyncadd [#allocation3], 4294967040 }
  0x32   :  { %1149 = dma.done.wait [#allocation6], 4160  }
  0x33   :  { %1150 = vsyncadd [#allocation6], 4294963136 }
  0x34   :  { %1151 = dma.done.wait [#allocation9], 4096  }
  0x35   :  { %1152 = vsyncadd [#allocation9], 4294963200  ;;  %v1165_v0 = vmov 0   ;;  %v951_v1 = vld [vmem:[#allocation5 + $0xe4] ss:$16 sps:$4 sm:$0xff]   ;;  %v89_v34 = vld [vmem:[#allocation2 + $0x8] sm:$0xff] }
  0x36   :  { %337 = vmatprep.mubr.bf16.mxu0 %v1165_v0  ;;  %380 = vmatprep.mubr.bf16.mxu1 %v1165_v0  ;;  %v953_v2 = vld [vmem:[#allocation5 + $0xec] ss:$16 sps:$4 sm:$0xff]   ;;  %v955_v3 = vld [vmem:[#allocation5 + $0xe0] ss:$16 sps:$4 sm:$0xff]   ;;  %v956_v4 = vld [vmem:[#allocation5 + $0xe8] ss:$16 sps:$4 sm:$0xff]  }
  0x37   :  { %305 = vmatprep.subr.bf16.mxu0 %v951_v1  ;;  %348 = vmatprep.subr.bf16.mxu1 %v953_v2  ;;  %v957_v5 = vld [vmem:[#allocation5 + $0xc4] ss:$16 sps:$4 sm:$0xff]   ;;  %v959_v6 = vld [vmem:[#allocation5 + $0xcc] ss:$16 sps:$4 sm:$0xff]   ;;  %v961_v7 = vld [vmem:[#allocation5 + $0xc0] ss:$16 sps:$4 sm:$0xff]  }
  0x38   :  { %306 = vmatpush1.bf16.msra.mxu0 %v955_v3  ;;  %349 = vmatpush1.bf16.msra.mxu1 %v956_v4  ;;  %v962_v8 = vld [vmem:[#allocation5 + $0xc8] ss:$16 sps:$4 sm:$0xff]   ;;  %v963_v9 = vld [vmem:[#allocation5 + $0xa4] ss:$16 sps:$4 sm:$0xff]   ;;  %v965_v10 = vld [vmem:[#allocation5 + $0xac] ss:$16 sps:$4 sm:$0xff]   ;;  %v125_v4 = vlaneseq }
  0x39   :  { %307 = vmatprep.subr.bf16.mxu0 %v957_v5  ;;  %350 = vmatprep.subr.bf16.mxu1 %v959_v6  ;;  %v967_v11 = vld [vmem:[#allocation5 + $0xa0] ss:$16 sps:$4 sm:$0xff]   ;;  %v968_v12 = vld [vmem:[#allocation5 + $0xa8] ss:$16 sps:$4 sm:$0xff]   ;;  %v969_v13 = vld [vmem:[#allocation5 + $0x84] ss:$16 sps:$4 sm:$0xff]  }
  0x3a   :  { %v971_v14 = vld [vmem:[#allocation5 + $0x8c] ss:$16 sps:$4 sm:$0xff]   ;;  %v973_v15 = vld [vmem:[#allocation5 + $0x80] ss:$16 sps:$4 sm:$0xff]   ;;  %v974_v16 = vld [vmem:[#allocation5 + $0x88] ss:$16 sps:$4 sm:$0xff]  }
  0x3b   :  { %v975_v17 = vld [vmem:[#allocation5 + $0x64] ss:$16 sps:$4 sm:$0xff]   ;;  %v977_v18 = vld [vmem:[#allocation5 + $0x6c] ss:$16 sps:$4 sm:$0xff]   ;;  %v979_v19 = vld [vmem:[#allocation5 + $0x60] ss:$16 sps:$4 sm:$0xff]  }
  0x3c   :  { %308 = vmatpush1.bf16.msra.mxu0 %v961_v7  ;;  %351 = vmatpush1.bf16.msra.mxu1 %v962_v8  ;;  %v980_v20 = vld [vmem:[#allocation5 + $0x68] ss:$16 sps:$4 sm:$0xff]   ;;  %v981_v21 = vld [vmem:[#allocation5 + $0x44] ss:$16 sps:$4 sm:$0xff]   ;;  %v983_v22 = vld [vmem:[#allocation5 + $0x4c] ss:$16 sps:$4 sm:$0xff]  }
  0x3d   :  { %309 = vmatprep.subr.bf16.mxu0 %v963_v9  ;;  %352 = vmatprep.subr.bf16.mxu1 %v965_v10  ;;  %v985_v23 = vld [vmem:[#allocation5 + $0x40] ss:$16 sps:$4 sm:$0xff]   ;;  %v986_v24 = vld [vmem:[#allocation5 + $0x48] ss:$16 sps:$4 sm:$0xff]   ;;  %v987_v25 = vld [vmem:[#allocation5 + $0x24] ss:$16 sps:$4 sm:$0xff]  }
  0x3e   :  { %v989_v26 = vld [vmem:[#allocation5 + $0x2c] ss:$16 sps:$4 sm:$0xff]   ;;  %v991_v27 = vld [vmem:[#allocation5 + $0x20] ss:$16 sps:$4 sm:$0xff]   ;;  %v992_v28 = vld [vmem:[#allocation5 + $0x28] ss:$16 sps:$4 sm:$0xff]  }
  0x3f   :  { %v993_v29 = vld [vmem:[#allocation5 + $0x4] ss:$16 sps:$4 sm:$0xff]   ;;  %v995_v30 = vld [vmem:[#allocation5 + $0xc] ss:$16 sps:$4 sm:$0xff]   ;;  %v997_v31 = vld [vmem:[#allocation5] ss:$16 sps:$4 sm:$0xff]  }
  0x40   :  { %310 = vmatpush1.bf16.msra.mxu0 %v967_v11  ;;  %353 = vmatpush1.bf16.msra.mxu1 %v968_v12  ;;  %v998_v32 = vld [vmem:[#allocation5 + $0x8] ss:$16 sps:$4 sm:$0xff]   ;;  %v88_v33 = vld [vmem:[#allocation2] sm:$0xff]  ;;  %v999_v36 = vld [vmem:[#allocation8 + $0x78] sm:$0xff]   ;;  %v126_v5 = vshrl.u32 %v125_v4, 7  ;;  %s1166_s17 = smov [#allocation10]  }
  0x41   :  { %311 = vmatprep.subr.bf16.mxu0 %v969_v13  ;;  %354 = vmatprep.subr.bf16.mxu1 %v971_v14  ;;  %v90_v35 = vpack.c.bf16 %v89_v34, %v88_v33  ;;  %v1000_v37 = vld [vmem:[#allocation8 + $0xf8] sm:$0xff]   ;;  %v1003_v40 = vld [vmem:[#allocation8 + $0x70] sm:$0xff]   ;;  %v1007_v44 = vld [vmem:[#allocation8 + $0x68] sm:$0xff]   ;;  %s816_s18 = sshll.u32 %s1166_s17, 4  ;;  %s817_s18 = int_to_ptr.vmem [resolvable:$true] %s816_s18 }
  0x42   :  { %v1001_v38 = vld [vmem:[#allocation8 + $0x38] sm:$0xff]   ;;  %v1004_v41 = vld [vmem:[#allocation8 + $0xf0] sm:$0xff]   ;;  %v1008_v45 = vld [vmem:[#allocation8 + $0xe8] sm:$0xff]   ;;  %v127_v6 = vsub.s32 0, %v126_v5  ;;  %v135_v7 = vsub.s32 2, %v126_v5  ;;  %v131_v9 = vsub.s32 1, %v126_v5  ;;  %p1132_p7 = scmp.lt.s32.totalorder %s817_s18, %s817_s18 }
  0x43   :  { %v1002_v39 = vld [vmem:[#allocation8 + $0xb8] sm:$0xff]   ;;  %v1005_v42 = vld [vmem:[#allocation8 + $0x30] sm:$0xff]   ;;  %v1009_v46 = vld [vmem:[#allocation8 + $0x28] sm:$0xff]   ;;  %v139_v10 = vsub.s32 3, %v126_v5  ;;  %s1127_s19 = scalar_lea.vmem %s817_s18, 256 }
  0x44   :  { %312 = vmatpush1.bf16.msra.mxu0 %v973_v15  ;;  %355 = vmatpush1.bf16.msra.mxu1 %v974_v16  ;;  %v1006_v43 = vld [vmem:[#allocation8 + $0xb0] sm:$0xff]   ;;  %v1010_v47 = vld [vmem:[#allocation8 + $0xa8] sm:$0xff]   ;;  %v1011_v48 = vld [vmem:[#allocation8 + $0x60] sm:$0xff]   ;;  %p1128_p6 = scmp.ne.s32.totalorder %s817_s18, %s1127_s19  ;;  %p1133_p8 = scmp.lt.s32.totalorder %s1127_s19, %s1127_s19 }
  0x45   :  { %313 = vmatprep.subr.bf16.mxu0 %v975_v17  ;;  %356 = vmatprep.subr.bf16.mxu1 %v977_v18  ;;  %v1012_v49 = vld [vmem:[#allocation8 + $0xe0] sm:$0xff]   ;;  %v1015_v52 = vld [vmem:[#allocation8 + $0x58] sm:$0xff]   ;;  %v1019_v56 = vld [vmem:[#allocation8 + $0x50] sm:$0xff]  }
  0x46   :  { %v1013_v50 = vld [vmem:[#allocation8 + $0x20] sm:$0xff]   ;;  %v1016_v53 = vld [vmem:[#allocation8 + $0xd8] sm:$0xff]   ;;  %v1020_v57 = vld [vmem:[#allocation8 + $0xd0] sm:$0xff]   ;;  %p1134_p9 = por %p1133_p8, %p1132_p7 }
  0x47   :  { %v1014_v51 = vld [vmem:[#allocation8 + $0xa0] sm:$0xff]   ;;  %v1017_v54 = vld [vmem:[#allocation8 + $0x18] sm:$0xff]   ;;  %v1021_v58 = vld [vmem:[#allocation8 + $0x10] sm:$0xff]  }
  0x48   :  { %314 = vmatpush1.bf16.msra.mxu0 %v979_v19  ;;  %357 = vmatpush1.bf16.msra.mxu1 %v980_v20  ;;  %v1018_v55 = vld [vmem:[#allocation8 + $0x98] sm:$0xff]   ;;  %v1022_v59 = vld [vmem:[#allocation8 + $0x90] sm:$0xff]   ;;  %v1023_v60 = vld [vmem:[#allocation8 + $0x48] sm:$0xff]   ;;  %p1135_p10 = pnand %p1134_p9, %p1128_p6 }
  0x49   :  { %315 = vmatprep.subr.bf16.mxu0 %v981_v21  ;;  %358 = vmatprep.subr.bf16.mxu1 %v983_v22  ;;  %v1024_v61 = vld [vmem:[#allocation8 + $0xc8] sm:$0xff]   ;;  %v1027_v0 = vld [vmem:[#allocation8 + $0x40] sm:$0xff]   ;;  %v123_v8 = vld [vmem:[#allocation7] sm:$0xf] }
  0x4a   :  { %v1025_v62 = vld [vmem:[#allocation8 + $0x8] sm:$0xff]   ;;  %v1028_v1 = vld [vmem:[#allocation8 + $0xc0] sm:$0xff]   ;;  %v128_v11 = vrot.slane %v123_v8, %v127_v6  ;;  %v136_v12 = vrot.slane %v123_v8, %v135_v7  ;;  %v132_v13 = vrot.slane %v123_v8, %v131_v9  ;;  %v140_v14 = vrot.slane %v123_v8, %v139_v10 }
  0x4b   :  { %v1026_v63 = vld [vmem:[#allocation8 + $0x88] sm:$0xff]   ;;  %v1029_v2 = vld [vmem:[#allocation8] sm:$0xff]  }
  0x4c   :  { %316 = vmatpush1.bf16.msra.mxu0 %v985_v23  ;;  %359 = vmatpush1.bf16.msra.mxu1 %v986_v24  ;;  %v1030_v3 = vld [vmem:[#allocation8 + $0x80] sm:$0xff]  }
  0x4d   :  { %317 = vmatprep.subr.bf16.mxu0 %v987_v25  ;;  %360 = vmatprep.subr.bf16.mxu1 %v989_v26 }
  0x50   :  { %318 = vmatpush1.bf16.msra.mxu0 %v991_v27  ;;  %361 = vmatpush1.bf16.msra.mxu1 %v992_v28 }
  0x51   :  { %319 = vmatprep.subr.bf16.mxu0 %v993_v29  ;;  %362 = vmatprep.subr.bf16.mxu1 %v995_v30 }
  0x54   :  { %320 = vmatpush1.bf16.msra.mxu0 %v997_v31  ;;  %363 = vmatpush1.bf16.msra.mxu1 %v998_v32 }
  0x55   :  { %895 = vmatprep.subr.bf16.mxu0 %v999_v36  ;;  %917 = vmatprep.subr.bf16.mxu1 %v1000_v37 }
  0x57   :  { %338 = vmatmul.mubr.bf16.vlgmr.msra.gmra.mxu0 %v90_v35  ;;  %381 = vmatmul.mubr.bf16.vlgmr.msra.gmra.mxu1 %v90_v35 }
  0x58   :  { %896 = vmatpush3.bf16.msra.mxu0 %v1001_v38  ;;  %918 = vmatpush3.bf16.msra.mxu1 %v1002_v39 }
  0x59   :  { %897 = vmatprep.subr.bf16.mxu0 %v1003_v40  ;;  %919 = vmatprep.subr.bf16.mxu1 %v1004_v41 }
  0x5c   :  { %898 = vmatpush3.bf16.msra.mxu0 %v1005_v42  ;;  %920 = vmatpush3.bf16.msra.mxu1 %v1006_v43 }
  0x5d   :  { %899 = vmatprep.subr.bf16.mxu0 %v1007_v44  ;;  %921 = vmatprep.subr.bf16.mxu1 %v1008_v45 }
  0x60   :  { %900 = vmatpush3.bf16.msra.mxu0 %v1009_v46  ;;  %922 = vmatpush3.bf16.msra.mxu1 %v1010_v47 }
  0x61   :  { %901 = vmatprep.subr.bf16.mxu0 %v1011_v48  ;;  %923 = vmatprep.subr.bf16.mxu1 %v1012_v49 }
  0x64   :  { %902 = vmatpush3.bf16.msra.mxu0 %v1013_v50  ;;  %924 = vmatpush3.bf16.msra.mxu1 %v1014_v51 }
  0x65   :  { %903 = vmatprep.subr.bf16.mxu0 %v1015_v52  ;;  %925 = vmatprep.subr.bf16.mxu1 %v1016_v53 }
  0x68   :  { %904 = vmatpush3.bf16.msra.mxu0 %v1017_v54  ;;  %926 = vmatpush3.bf16.msra.mxu1 %v1018_v55 }
  0x69   :  { %905 = vmatprep.subr.bf16.mxu0 %v1019_v56  ;;  %927 = vmatprep.subr.bf16.mxu1 %v1020_v57 }
  0x6c   :  { %906 = vmatpush3.bf16.msra.mxu0 %v1021_v58  ;;  %928 = vmatpush3.bf16.msra.mxu1 %v1022_v59 }
  0x6d   :  { %907 = vmatprep.subr.bf16.mxu0 %v1023_v60  ;;  %929 = vmatprep.subr.bf16.mxu1 %v1024_v61 }
  0x70   :  { %908 = vmatpush3.bf16.msra.mxu0 %v1025_v62  ;;  %930 = vmatpush3.bf16.msra.mxu1 %v1026_v63 }
  0x71   :  { %909 = vmatprep.subr.bf16.mxu0 %v1027_v0  ;;  %931 = vmatprep.subr.bf16.mxu1 %v1028_v1 }
  0x74   :  { %910 = vmatpush3.bf16.msra.mxu0 %v1029_v2  ;;  %932 = vmatpush3.bf16.msra.mxu1 %v1030_v3 }
 0x117   :  { %v339_v15 = vpop.f32.mrf.mxu0  ;;  %v382_v16 = vpop.f32.mrf.mxu1 }
 0x118   :  { %v1212_v17 = vadd.f32 %v339_v15, %v128_v11  ;;  %v1214_v18 = vadd.f32 %v382_v16, %v136_v12 }
 0x119   :  { %v341_v19 = vpop.f32.mrf.mxu0  ;;  %v384_v20 = vpop.f32.mrf.mxu1 }
 0x11a   :  { %v399_v21 = vmul.f32 0.044715, %v1212_v17  ;;  %v401_v22 = vmul.f32 0.044715, %v1214_v18  ;;  %v342_v23 = vadd.f32 %v341_v19, %v132_v13  ;;  %v1218_v24 = vadd.f32 %v384_v20, %v140_v14 }
 0x11b   :  { %v343_v25 = vpop.f32.mrf.mxu0  ;;  %v386_v26 = vpop.f32.mrf.mxu1  ;;  %v391_v15 = vmul.f32 0.5, %v1212_v17 }
 0x11c   :  { %v407_v27 = vmul.f32 %v399_v21, %v1212_v17  ;;  %v409_v28 = vmul.f32 %v401_v22, %v1214_v18  ;;  %v400_v29 = vmul.f32 0.044715, %v342_v23  ;;  %v402_v30 = vmul.f32 0.044715, %v1218_v24 }
 0x11d   :  { %v344_v31 = vadd.f32 %v343_v25, %v128_v11  ;;  %v1223_v32 = vadd.f32 %v386_v26, %v136_v12  ;;  %v345_v33 = vpop.f32.mrf.mxu0  ;;  %v388_v34 = vpop.f32.mrf.mxu1 }
 0x11e   :  { %v415_v35 = vmul.f32 %v407_v27, %v1212_v17  ;;  %v417_v36 = vmul.f32 %v409_v28, %v1214_v18  ;;  %v408_v37 = vmul.f32 %v400_v29, %v342_v23  ;;  %v410_v38 = vmul.f32 %v402_v30, %v1218_v24 }
 0x11f   :  { %v403_v39 = vmul.f32 0.044715, %v344_v31  ;;  %v405_v40 = vmul.f32 0.044715, %v1223_v32  ;;  %v346_v41 = vadd.f32 %v345_v33, %v132_v13  ;;  %v389_v42 = vadd.f32 %v388_v34, %v140_v14 }
 0x120   :  { %v423_v43 = vadd.f32 %v415_v35, %v1212_v17  ;;  %v425_v44 = vadd.f32 %v417_v36, %v1214_v18  ;;  %v416_v45 = vmul.f32 %v408_v37, %v342_v23  ;;  %v418_v46 = vmul.f32 %v410_v38, %v1218_v24 }
 0x121   :  { %v411_v47 = vmul.f32 %v403_v39, %v344_v31  ;;  %v413_v48 = vmul.f32 %v405_v40, %v1223_v32  ;;  %v404_v49 = vmul.f32 0.044715, %v346_v41  ;;  %v406_v50 = vmul.f32 0.044715, %v389_v42 }
 0x122   :  { %v431_v51 = vmul.f32 0.7978846, %v423_v43  ;;  %v433_v52 = vmul.f32 0.7978846, %v425_v44  ;;  %v424_v53 = vadd.f32 %v416_v45, %v342_v23  ;;  %v426_v59 = vadd.f32 %v418_v46, %v1218_v24 }
 0x123   :  { %v419_v54 = vmul.f32 %v411_v47, %v344_v31  ;;  %v421_v55 = vmul.f32 %v413_v48, %v1223_v32  ;;  %v412_v56 = vmul.f32 %v404_v49, %v346_v41  ;;  %v414_v57 = vmul.f32 %v406_v50, %v389_v42  ;;  %v830_v50 = vld [vmem:[%s1253_s4] ss:$0 sm:$0xff] }
 0x124   :  { %v432_v58 = vmul.f32 0.7978846, %v424_v53  ;;  %1031 = vtanh.f32 %v431_v51  ;;  %v434_v0 = vmul.f32 0.7978846, %v426_v59  ;;  %v392_v13 = vmul.f32 0.5, %v342_v23 }
 0x125   :  { %v427_v60 = vadd.f32 %v419_v54, %v344_v31  ;;  %v429_v61 = vadd.f32 %v421_v55, %v1223_v32  ;;  %v420_v62 = vmul.f32 %v412_v56, %v346_v41  ;;  %1033 = vtanh.f32 %v433_v52 }
 0x126   :  { %v422_v63 = vmul.f32 %v414_v57, %v389_v42  ;;  %1035 = vtanh.f32 %v432_v58  ;;  %v395_v21 = vmul.f32 0.5, %v344_v31  ;;  %v396_v27 = vmul.f32 0.5, %v346_v41 }
 0x127   :  { %v435_v1 = vmul.f32 0.7978846, %v427_v60  ;;  %v437_v2 = vmul.f32 0.7978846, %v429_v61  ;;  %v428_v3 = vadd.f32 %v420_v62, %v346_v41  ;;  %1037 = vtanh.f32 %v434_v0 }
 0x128   :  { %v430_v4 = vadd.f32 %v422_v63, %v389_v42  ;;  %v397_v29 = vmul.f32 0.5, %v1223_v32  ;;  %v394_v33 = vmul.f32 0.5, %v1218_v24  ;;  %v398_v34 = vmul.f32 0.5, %v389_v42 }
 0x129   :  { %1039 = vtanh.f32 %v435_v1  ;;  %v436_v5 = vmul.f32 0.7978846, %v428_v3  ;;  %v393_v17 = vmul.f32 0.5, %v1214_v18 }
 0x12a   :  { %1041 = vtanh.f32 %v437_v2  ;;  %v438_v6 = vmul.f32 0.7978846, %v430_v4 }
 0x12b   :  { %1043 = vtanh.f32 %v436_v5 }
 0x12c   :  { %1045 = vtanh.f32 %v438_v6 }
 0x131   :  { %v1032_v7 = vpop.eup %1031 }
 0x132   :  { %v1034_v8 = vpop.eup %1033  ;;  %v447_v22 = vadd.f32 1.0, %v1032_v7 }
 0x133   :  { %v1036_v9 = vpop.eup %1035  ;;  %v449_v30 = vadd.f32 1.0, %v1034_v8 }
 0x134   :  { %v1038_v10 = vpop.eup %1037  ;;  %v448_v14 = vadd.f32 1.0, %v1036_v9  ;;  %v455_v40 = vmul.f32 %v447_v22, %v391_v15 }
 0x135   :  { %v450_v20 = vadd.f32 1.0, %v1038_v10  ;;  %v457_v44 = vmul.f32 %v449_v30, %v393_v17 }
 0x136   :  { %v1040_v11 = vpop.eup %1039  ;;  %v456_v36 = vmul.f32 %v448_v14, %v392_v13 }
 0x137   :  { %v1042_v12 = vpop.eup %1041  ;;  %v451_v16 = vadd.f32 1.0, %v1040_v11  ;;  %v458_v39 = vmul.f32 %v450_v20, %v394_v33 }
 0x138   :  { %v1044_v19 = vpop.eup %1043  ;;  %v453_v25 = vadd.f32 1.0, %v1042_v12 }
 0x139   :  { %v1046_v26 = vpop.eup %1045  ;;  %v452_v28 = vadd.f32 1.0, %v1044_v19  ;;  %v459_v23 = vmul.f32 %v451_v16, %v395_v21 }
 0x13a   :  { %v454_v35 = vadd.f32 1.0, %v1046_v26  ;;  %v461_v38 = vmul.f32 %v453_v25, %v397_v29 }
 0x13b   :  { %v460_v37 = vmul.f32 %v452_v28, %v396_v27  ;;  %v465_v45 = vpack.c.bf16 %v459_v23, %v455_v40 }
 0x13c   :  { %v462_v31 = vmul.f32 %v454_v35, %v398_v34  ;;  %v467_v32 = vpack.c.bf16 %v461_v38, %v457_v44 }
 0x13d   :  { %v466_v43 = vpack.c.bf16 %v460_v37, %v456_v36 }
 0x13e   :  { %v468_v41 = vpack.c.bf16 %v462_v31, %v458_v39 }
 0x13f   :  { %757 = vmatprep.mubr.bf16.mxu0 %v466_v43 }
 0x140   :  { %798 = vmatprep.mubr.bf16.mxu1 %v468_v41  ;;  %758 = vmatmul.mubr.bf16.vlgmr.msra.gmra.mxu0 %v465_v45 }
 0x141   :  { %799 = vmatmul.mubr.bf16.vlgmr.msra.gmra.mxu1 %v467_v32 }
 0x200   :  { %v911_v24 = vpop.f32.mrf.mxu0 }
 0x201   :  { %v933_v42 = vpop.f32.mrf.mxu1 }
 0x202   :  { %v912_v46 = vpop.f32.mrf.mxu0 }
 0x203   :  { %v913_v47 = vadd.f32 %v912_v46, %v911_v24  ;;  %v934_v48 = vpop.f32.mrf.mxu1 }
 0x204   :  { %v935_v49 = vadd.f32 %v934_v48, %v933_v42  ;;  %v914_v18 = vpop.f32.mrf.mxu0 }
 0x205   :  { %v936_v51 = vpop.f32.mrf.mxu1 }
 0x206   :  { %v801_v52 = vadd.f32 %v935_v49, %v913_v47  ;;  %v915_v53 = vpop.f32.mrf.mxu0 }
 0x207   :  { %v916_v54 = vadd.f32 %v915_v53, %v914_v18  ;;  %v937_v55 = vpop.f32.mrf.mxu1 }
 0x208   :  { %v807_v56 = vadd.f32 %v830_v50, %v801_v52  ;;  %v938_v57 = vadd.f32 %v937_v55, %v936_v51 }
 0x20a   :  { %809 = vst [vmem:[#allocation10] sm:$0xff] %v807_v56  ;;  %v804_v58 = vadd.f32 %v938_v57, %v916_v54 }
 0x20c   :  { %v808_v59 = vadd.f32 %v830_v50, %v804_v58 }
 0x20e   :  { %810 = vst [vmem:[#allocation10 + $0x8] sm:$0xff] %v808_v59 }
 0x20f   :  { %1138 = shalt.err (!%p1135_p10)
}
 0x210   :  { %822 = dma.vmem_to_hbm [thread:$0]  %s817_s18, 256, %s1254_s5, [#allocation4], %s1159_s28, %s1159_s28, %s1160_s29  }
 0x211   :  { %1153 = dma.done.wait [#allocation4], 256  }
 0x212   :  { %1154 = vsyncadd [#allocation4], 4294967040 }
 0x213   :  { %826 = vsyncpa [#allocation3], 1 }
 0x214   :  { %827 = vsyncpa [#allocation6], 1 }
 0x215   :  { %828 = vsyncpa [#allocation9], 1 }
 0x216   :  { %829 = vsyncpa [#allocation4], 1 }

</bundles_post_ra>
